<compile_context>
chip_gen: v7x
topology: tpu7x:2x2x1
jax: 0.10.0
libtpu: 0.0.40
codegen_flags: <defaults>
</compile_context>

<pallas_src>
import math

import jax
import jax.numpy as jnp
from jax.experimental import pallas as pl
from jax.experimental.pallas import tpu as pltpu

LANE = 128          # TPU vreg lane width
SUBLANE_BF16 = 16   # bf16 vregs pack 16 sublanes


def _round_up(n, m):
    return ((n + m - 1) // m) * m


def dqn_mlp_kernel(x_ref, w1_ref, b1_ref, w2_ref, b2_ref, w3_ref, b3_ref, o_ref):
    """Fused fc1->relu->fc2->relu->fc3 for one batch tile.

    Matmuls hit the MXU with bf16 inputs / f32 accumulation; bias add + ReLU run on the VPU
    in f32.  Output block is narrow (tb, action_size): only logical Q-values are stored.
    """
    x = x_ref[...]                                                                  # (tb, S) bf16
    h1 = jnp.dot(x, w1_ref[...], preferred_element_type=jnp.float32) + b1_ref[...]  # f32 acc
    h1 = jnp.maximum(h1, 0.0).astype(jnp.bfloat16)
    h2 = jnp.dot(h1, w2_ref[...], preferred_element_type=jnp.float32) + b2_ref[...]
    h2 = jnp.maximum(h2, 0.0).astype(jnp.bfloat16)
    out = jnp.dot(h2, w3_ref[...], preferred_element_type=jnp.float32) + b3_ref[...]
    o_ref[...] = out.astype(o_ref.dtype)                                            # (tb, A) store


def prepare_padded_params(params):
    """Pad hidden dims to 128 lanes and cast weights to bf16 ONCE (hoisted out of the hot path).

    Zero padding keeps the math exact: padded weight rows/columns are zero and ReLU(0) = 0.
    """
    w1, b1, w2, b2, w3, b3 = params
    state_size, hidden = w1.shape
    action_size = w3.shape[1]
    hidden_p = _round_up(hidden, LANE)

    w1p = jnp.zeros((state_size, hidden_p), jnp.bfloat16).at[:, :hidden].set(
        w1.astype(jnp.bfloat16))
    b1p = jnp.zeros((1, hidden_p), jnp.float32).at[:, :hidden].set(
        b1.astype(jnp.float32).reshape(1, -1))
    w2p = jnp.zeros((hidden_p, hidden_p), jnp.bfloat16).at[:hidden, :hidden].set(
        w2.astype(jnp.bfloat16))
    b2p = jnp.zeros((1, hidden_p), jnp.float32).at[:, :hidden].set(
        b2.astype(jnp.float32).reshape(1, -1))
    # fc3: only the input (hidden) dim is padded; output stays at the true action_size so the
    # kernel never computes or writes padded Q-value columns.
    w3p = jnp.zeros((hidden_p, action_size), jnp.bfloat16).at[:hidden, :].set(
        w3.astype(jnp.bfloat16))
    b3p = b3.astype(jnp.float32).reshape(1, action_size)
    return (w1p, b1p, w2p, b2p, w3p, b3p)


def _jnp_forward_padded(x, padded_params):
    # Plain-XLA path for tiny batches (online action selection); same bf16/f32 math.
    w1p, b1p, w2p, b2p, w3p, b3p = padded_params
    h = jnp.maximum(jnp.dot(x.astype(jnp.bfloat16), w1p,
                            preferred_element_type=jnp.float32) + b1p, 0.0)
    h = jnp.maximum(jnp.dot(h.astype(jnp.bfloat16), w2p,
                            preferred_element_type=jnp.float32) + b2p, 0.0)
    out = jnp.dot(h.astype(jnp.bfloat16), w3p,
                  preferred_element_type=jnp.float32) + b3p
    return out.astype(jnp.bfloat16)


def dqn_forward(x, padded_params, *, block_batch=1024, force_pallas=False):
    """Forward pass equivalent to DQN.forward. `padded_params` = prepare_padded_params(params)."""
    w1p, b1p, w2p, b2p, w3p, b3p = padded_params
    batch, state_size = x.shape
    hidden_p = w1p.shape[1]
    action_size = w3p.shape[1]

    # Tiny-batch fallback: kernel launch + DMA setup dwarfs the math.
    if not force_pallas and batch <= 64:
        return _jnp_forward_padded(x, padded_params)

    # ---- batch tiling -------------------------------------------------------------------
    batch_al = _round_up(batch, SUBLANE_BF16)               # bf16 sublane packing
    tb = min(block_batch, batch_al)
    # Guarantee >=2 grid steps for large batches so the "parallel" batch axis can shard
    # across v7x's two TensorCores (no-op on v5e/v6e).
    if batch_al >= 1024:
        tb = min(tb, _round_up((batch_al + 1) // 2, SUBLANE_BF16))
    tb = max(_round_up(tb, SUBLANE_BF16), SUBLANE_BF16)
    batch_p = _round_up(batch_al, tb)
    grid = (batch_p // tb,)

    # ---- activations: only pad/cast x when actually needed -------------------------------
    if batch == batch_p and x.dtype == jnp.bfloat16:
        xp = x
    else:
        xp = jnp.zeros((batch_p, state_size), jnp.bfloat16).at[:batch, :].set(
            x.astype(jnp.bfloat16))

    flops = 2 * batch_p * (state_size * hidden_p + hidden_p * hidden_p
                           + hidden_p * action_size)
    bytes_accessed = (xp.size * 2                     # bf16 activations in
                      + (w1p.size + w2p.size + w3p.size) * 2
                      + (b1p.size + b2p.size + b3p.size) * 4
                      + batch_p * action_size * 2)    # bf16 Q-values out

    out_padded = pl.pallas_call(
        dqn_mlp_kernel,
        out_shape=jax.ShapeDtypeStruct((batch_p, action_size), jnp.bfloat16),
        grid=grid,
        in_specs=[
            # batch-tiled activations (pipelined HBM<->VMEM DMA)
            pl.BlockSpec((tb, state_size), lambda i: (i, 0)),
            # weights / biases: constant index_map -> VMEM-resident across all grid steps
            pl.BlockSpec((state_size, hidden_p), lambda i: (0, 0)),
            pl.BlockSpec((1, hidden_p), lambda i: (0, 0)),
            pl.BlockSpec((hidden_p, hidden_p), lambda i: (0, 0)),
            pl.BlockSpec((1, hidden_p), lambda i: (0, 0)),
            pl.BlockSpec((hidden_p, action_size), lambda i: (0, 0)),
            pl.BlockSpec((1, action_size), lambda i: (0, 0)),
        ],
        # Narrow output block: last dim == full array dim (action_size) -> legal, and only the
        # logical Q-values hit HBM (no 128-lane zero padding written back).
        out_specs=pl.BlockSpec((tb, action_size), lambda i: (i, 0)),
        compiler_params=pltpu.CompilerParams(
            dimension_semantics=("parallel",),
        ),
        cost_estimate=pl.CostEstimate(
            flops=flops, bytes_accessed=bytes_accessed, transcendentals=0),
    )(xp, w1p, b1p, w2p, b2p, w3p, b3p)

    return out_padded[:batch, :]


def init_linear(key, in_features, out_features):
    # Deterministic init mimicking PyTorch nn.Linear default: U(-1/sqrt(in), 1/sqrt(in)).
    kw, kb = jax.random.split(key)
    bound = 1.0 / math.sqrt(in_features)
    w = jax.random.uniform(kw, (in_features, out_features), jnp.float32, -bound, bound)
    b = jax.random.uniform(kb, (1, out_features), jnp.float32, -bound, bound)
    return w, b


def init_dqn_params(key, state_size, action_size, hidden=64):
    k1, k2, k3 = jax.random.split(key, 3)
    w1, b1 = init_linear(k1, state_size, hidden)
    w2, b2 = init_linear(k2, hidden, hidden)
    w3, b3 = init_linear(k3, hidden, action_size)
    return (w1, b1, w2, b2, w3, b3)


def reference_forward(x, params):
    # Pure-JAX f32 reference of the PyTorch module.
    w1, b1, w2, b2, w3, b3 = params
    h = jnp.maximum(x @ w1 + b1, 0.0)
    h = jnp.maximum(h @ w2 + b2, 0.0)
    return h @ w3 + b3


if __name__ == "__main__":
    batch = 2
    state_size = 16
    action_size = 4

    key = jax.random.PRNGKey(0)
    kx, kx2, kp = jax.random.split(key, 3)
    x = jax.random.normal(kx, (batch, state_size), jnp.float32)
    params = init_dqn_params(kp, state_size, action_size)
    padded_params = prepare_padded_params(params)   # hoisted: done once, reused every forward

    out = dqn_forward(x, padded_params, force_pallas=True)
    out = jax.block_until_ready(out)

    ref = reference_forward(x, params)
    assert out.shape == (batch, action_size)
    # bf16 matmul inputs / bf16 output with f32 accumulation -> bf16-appropriate tolerance.
    err = jnp.max(jnp.abs(out.astype(jnp.float32) - ref))
    assert jnp.allclose(out.astype(jnp.float32), ref, atol=2e-2, rtol=2e-2), (
        f"max abs err = {err}")

    # Exercise the multi-tile grid path (tail padding + >1 grid step) at small scale.
    batch2 = 200
    x2 = jax.random.normal(kx2, (batch2, state_size), jnp.float32)
    out2 = jax.block_until_ready(
        dqn_forward(x2, padded_params, block_batch=64, force_pallas=True))
    ref2 = reference_forward(x2, params)
    assert out2.shape == (batch2, action_size)
    assert jnp.allclose(out2.astype(jnp.float32), ref2, atol=2e-2, rtol=2e-2)

    print("KERNEL_OK")
</pallas_src>

<mosaic_0001>
module attributes {stable_mosaic.version = 11 : i64} {
  func.func @dqn_mlp_kernel(%arg0: i32, %arg1: memref<16x16xbf16, #tpu.memory_space<vmem>>, %arg2: memref<16x128xbf16, #tpu.memory_space<vmem>>, %arg3: memref<1x128xf32, #tpu.memory_space<vmem>>, %arg4: memref<128x128xbf16, #tpu.memory_space<vmem>>, %arg5: memref<1x128xf32, #tpu.memory_space<vmem>>, %arg6: memref<128x4xbf16, #tpu.memory_space<vmem>>, %arg7: memref<1x4xf32, #tpu.memory_space<vmem>>, %arg8: memref<16x4xbf16, #tpu.memory_space<vmem>>) attributes {dimension_semantics = [#tpu.dimension_semantics<parallel>], iteration_bounds = array<i64: 1>, scalar_prefetch = 0 : i64, scratch_operands = 0 : i64, tpu.core_type = #tpu.core_type<tc>, window_params = [{transform_indices = @transform_0, window_bounds = array<i64: 16, 16>}, {pipeline_mode = #tpu.pipeline_mode<synchronous>, transform_indices = @transform_1, window_bounds = array<i64: 16, 128>}, {pipeline_mode = #tpu.pipeline_mode<synchronous>, transform_indices = @transform_2, window_bounds = array<i64: 1, 128>}, {pipeline_mode = #tpu.pipeline_mode<synchronous>, transform_indices = @transform_3, window_bounds = array<i64: 128, 128>}, {pipeline_mode = #tpu.pipeline_mode<synchronous>, transform_indices = @transform_4, window_bounds = array<i64: 1, 128>}, {pipeline_mode = #tpu.pipeline_mode<synchronous>, transform_indices = @transform_5, window_bounds = array<i64: 128, 4>}, {pipeline_mode = #tpu.pipeline_mode<synchronous>, transform_indices = @transform_6, window_bounds = array<i64: 1, 4>}, {transform_indices = @transform_7, window_bounds = array<i64: 16, 4>}]} {
    %c0 = arith.constant 0 : index
    %c0_0 = arith.constant 0 : index
    %0 = vector.load %arg1[%c0, %c0_0] : memref<16x16xbf16, #tpu.memory_space<vmem>>, vector<16x16xbf16>
    %c0_1 = arith.constant 0 : index
    %c0_2 = arith.constant 0 : index
    %1 = vector.load %arg2[%c0_1, %c0_2] : memref<16x128xbf16, #tpu.memory_space<vmem>>, vector<16x128xbf16>
    %cst = arith.constant dense<0.000000e+00> : vector<16x128xf32>
    %2 = tpu.matmul %0, %1, %cst {dimension_numbers = #tpu.dot_dimension_numbers<[1], [0], [0], [1], [0, 0, 1, 1], [], []>} : vector<16x16xbf16>, vector<16x128xbf16>, vector<16x128xf32> -> vector<16x128xf32>
    %c0_3 = arith.constant 0 : index
    %c0_4 = arith.constant 0 : index
    %3 = vector.load %arg3[%c0_3, %c0_4] : memref<1x128xf32, #tpu.memory_space<vmem>>, vector<1x128xf32>
    %4 = vector.broadcast %3 : vector<1x128xf32> to vector<16x128xf32>
    %5 = arith.addf %2, %4 : vector<16x128xf32>
    %cst_5 = arith.constant 0.000000e+00 : f32
    %6 = vector.broadcast %cst_5 : f32 to vector<16x128xf32>
    %7 = arith.maximumf %5, %6 : vector<16x128xf32>
    %8 = arith.truncf %7 : vector<16x128xf32> to vector<16x128xbf16>
    %c0_6 = arith.constant 0 : index
    %c0_7 = arith.constant 0 : index
    %9 = vector.load %arg4[%c0_6, %c0_7] : memref<128x128xbf16, #tpu.memory_space<vmem>>, vector<128x128xbf16>
    %cst_8 = arith.constant dense<0.000000e+00> : vector<16x128xf32>
    %10 = tpu.matmul %8, %9, %cst_8 {dimension_numbers = #tpu.dot_dimension_numbers<[1], [0], [0], [1], [0, 0, 1, 1], [], []>} : vector<16x128xbf16>, vector<128x128xbf16>, vector<16x128xf32> -> vector<16x128xf32>
    %c0_9 = arith.constant 0 : index
    %c0_10 = arith.constant 0 : index
    %11 = vector.load %arg5[%c0_9, %c0_10] : memref<1x128xf32, #tpu.memory_space<vmem>>, vector<1x128xf32>
    %12 = vector.broadcast %11 : vector<1x128xf32> to vector<16x128xf32>
    %13 = arith.addf %10, %12 : vector<16x128xf32>
    %cst_11 = arith.constant 0.000000e+00 : f32
    %14 = vector.broadcast %cst_11 : f32 to vector<16x128xf32>
    %15 = arith.maximumf %13, %14 : vector<16x128xf32>
    %16 = arith.truncf %15 : vector<16x128xf32> to vector<16x128xbf16>
    %c0_12 = arith.constant 0 : index
    %c0_13 = arith.constant 0 : index
    %17 = vector.load %arg6[%c0_12, %c0_13] : memref<128x4xbf16, #tpu.memory_space<vmem>>, vector<128x4xbf16>
    %cst_14 = arith.constant dense<0.000000e+00> : vector<16x4xf32>
    %18 = tpu.matmul %16, %17, %cst_14 {dimension_numbers = #tpu.dot_dimension_numbers<[1], [0], [0], [1], [0, 0, 1, 1], [], []>} : vector<16x128xbf16>, vector<128x4xbf16>, vector<16x4xf32> -> vector<16x4xf32>
    %c0_15 = arith.constant 0 : index
    %c0_16 = arith.constant 0 : index
    %19 = vector.load %arg7[%c0_15, %c0_16] : memref<1x4xf32, #tpu.memory_space<vmem>>, vector<1x4xf32>
    %20 = vector.broadcast %19 : vector<1x4xf32> to vector<16x4xf32>
    %21 = arith.addf %18, %20 : vector<16x4xf32>
    %22 = arith.truncf %21 : vector<16x4xf32> to vector<16x4xbf16>
    %c0_17 = arith.constant 0 : index
    %c0_18 = arith.constant 0 : index
    %23 = vector.load %arg8[%c0_17, %c0_18] : memref<16x4xbf16, #tpu.memory_space<vmem>>, vector<16x4xbf16>
    tpu.vector_store %arg8[%c0_17, %c0_18], %22 {strides = array<i32>} : memref<16x4xbf16, #tpu.memory_space<vmem>>, vector<16x4xbf16>,
    return
  }
  func.func @transform_0(%arg0: i32) -> (i32, i32) {
    %c0_i32 = arith.constant 0 : i32
    %c0_i32_0 = arith.constant 0 : i32
    return %arg0, %c0_i32 : i32, i32
  }
  func.func @transform_1(%arg0: i32) -> (i32, i32) {
    %c0_i32 = arith.constant 0 : i32
    %c0_i32_0 = arith.constant 0 : i32
    %c0_i32_1 = arith.constant 0 : i32
    return %c0_i32, %c0_i32_0 : i32, i32
  }
  func.func @transform_2(%arg0: i32) -> (i32, i32) {
    %c0_i32 = arith.constant 0 : i32
    %c0_i32_0 = arith.constant 0 : i32
    %c0_i32_1 = arith.constant 0 : i32
    return %c0_i32, %c0_i32_0 : i32, i32
  }
  func.func @transform_3(%arg0: i32) -> (i32, i32) {
    %c0_i32 = arith.constant 0 : i32
    %c0_i32_0 = arith.constant 0 : i32
    %c0_i32_1 = arith.constant 0 : i32
    return %c0_i32, %c0_i32_0 : i32, i32
  }
  func.func @transform_4(%arg0: i32) -> (i32, i32) {
    %c0_i32 = arith.constant 0 : i32
    %c0_i32_0 = arith.constant 0 : i32
    %c0_i32_1 = arith.constant 0 : i32
    return %c0_i32, %c0_i32_0 : i32, i32
  }
  func.func @transform_5(%arg0: i32) -> (i32, i32) {
    %c0_i32 = arith.constant 0 : i32
    %c0_i32_0 = arith.constant 0 : i32
    %c0_i32_1 = arith.constant 0 : i32
    return %c0_i32, %c0_i32_0 : i32, i32
  }
  func.func @transform_6(%arg0: i32) -> (i32, i32) {
    %c0_i32 = arith.constant 0 : i32
    %c0_i32_0 = arith.constant 0 : i32
    %c0_i32_1 = arith.constant 0 : i32
    return %c0_i32, %c0_i32_0 : i32, i32
  }
  func.func @transform_7(%arg0: i32) -> (i32, i32) {
    %c0_i32 = arith.constant 0 : i32
    %c0_i32_0 = arith.constant 0 : i32
    return %arg0, %c0_i32 : i32, i32
  }
}

</mosaic_0001>

<bundles_post_ra>
// kernel: tpu_custom_call.1
= control target key start
LH: loop header
LB: loop body
LE: loop exit
PB: predicated region body
PF: predicated region fallthrough
CT: control target
= control target key end

     0   :  { %12 = vsyncpa [#allocation3], 0  ;;  %s493_s24 = smov [#allocation2]   ;;  %s636_s0 = inlined_call_operand.vmem [shape: bf16[16,16], index: 0, kind: input, shape index: {}]   ;;  %s637_s1 = inlined_call_operand.hbm [shape: bf16[16,128], index: 1, kind: input, shape index: {}]   ;;  %s638_s2 = inlined_call_operand.vmem [shape: f32[1,128], index: 2, kind: input, shape index: {}]   ;;  %s639_s3 = inlined_call_operand.vmem [shape: bf16[128,128], index: 3, kind: input, shape index: {}]   ;;  %s640_s4 = inlined_call_operand.vmem [shape: f32[1,128], index: 4, kind: input, shape index: {}]   ;;  %s641_s5 = inlined_call_operand.vmem [shape: bf16[128,4], index: 5, kind: input, shape index: {}]   ;;  %s642_s6 = inlined_call_operand.vmem [shape: f32[1,4], index: 6, kind: input, shape index: {}]   ;;  %s643_s7 = inlined_call_operand.vmem [shape: bf16[16,4], index: 7, kind: output, shape index: {}]  }
   0x1   :  { %s20_s25 = sshll.u32 %s493_s24, 4  ;;  %s469_s28 = scalar_lea.hbm %s637_s1, 128  ;;  %s21_s25 = int_to_ptr.vmem [resolvable:$true] %s20_s25 }
   0x2   :  { %p470_p0 = scmp.ne.s32.totalorder %s637_s1, %s469_s28  ;;  %p473_p1 = scmp.lt.u32.totalorder %s469_s28, %s637_s1 }
   0x4   :  { %p475_p2 = pnand %p473_p1, %p470_p0 }
   0x6   :  { %478 = shalt.err (!%p475_p2)
}
   0x7   :  { %s479_s10 = scalar_lea.vmem %s21_s25, 128  ;;  %p484_p4 = scmp.lt.s32.totalorder %s21_s25, %s21_s25 }
   0x8   :  { %p480_p3 = scmp.ne.s32.totalorder %s21_s25, %s479_s10  ;;  %p485_p5 = scmp.lt.s32.totalorder %s479_s10, %s479_s10 }
   0xa   :  { %p486_p6 = por %p485_p5, %p484_p4 }
   0xc   :  { %p487_p7 = pnand %p486_p6, %p480_p3 }
   0xe   :  { %490 = shalt.err (!%p487_p7)
}
   0xf   :  { %s494_s11 = smov 64   ;;  %s495_s12 = smov 4  }
  0x10   :  { %26 = dma.hbm_to_vmem [thread:$0]  %s637_s1, 128, %s21_s25, [#allocation3], %s494_s11, %s494_s11, %s495_s12  }
  0x11   :  { %491 = dma.done.wait [#allocation3], 128  }
  0x12   :  { %492 = vsyncadd [#allocation3], 4294967168  ;;  %v496_v0 = vmov 0.0   ;;  %vm497_vm0 = vmmov 0   ;;  %v451_v1 = vld [vmem:[#allocation2] sm:$0xff]   ;;  %vm63_vm1 = vcmask 130048  }
  0x13   :  { %400 = vmatprep.subr.bf16.mxu0 %v496_v0  ;;  %402 = vmatprep.mubr.msk.bf16.mxu0 %vm497_vm0, %v496_v0  ;;  %v452_v2 = vld [vmem:[%s636_s0] sm:$0xff]   ;;  %v454_v4 = vld [vmem:[%s639_s3 + $0x8] sm:$0xff]   ;;  %v455_v5 = vld [vmem:[%s639_s3 + $0x10] sm:$0xff]   ;;  %vm346_vm2 = vcmask 27648  }
  0x14   :  { %406 = vmatprep.subr.bf16.mxu1 %v496_v0  ;;  %422 = vmatprep.mubr.msk.bf16.mxu1 %vm497_vm0, %v496_v0  ;;  %v453_v3 = vld [vmem:[%s639_s3] sm:$0xff]   ;;  %v456_v6 = vld [vmem:[%s639_s3 + $0x18] sm:$0xff]   ;;  %v458_v8 = vld [vmem:[%s639_s3 + $0x28] sm:$0xff]  }
  0x15   :  { %401 = vmatpush3.bf16.msra.mxu0 %v451_v1  ;;  %407 = vmatpush3.bf16.msra.mxu1 %v453_v3  ;;  %v457_v7 = vld [vmem:[%s639_s3 + $0x20] sm:$0xff]   ;;  %v459_v9 = vld [vmem:[%s639_s3 + $0x30] sm:$0xff]   ;;  %v460_v10 = vld [vmem:[%s639_s3 + $0x38] sm:$0xff]  }
  0x16   :  { %426 = vmatprep.subr.bf16.mxu0 %v496_v0  ;;  %408 = vmatprep.subr.bf16.mxu1 %v496_v0  ;;  %v461_v11 = vld [vmem:[%s641_s5] sm:$0xff]   ;;  %v462_v12 = vld [vmem:[%s641_s5 + $0x8] sm:$0xff]   ;;  %v463_v13 = vld [vmem:[%s641_s5 + $0x10] sm:$0xff]  }
  0x17   :  { %v464_v14 = vld [vmem:[%s641_s5 + $0x18] sm:$0xff]   ;;  %v465_v15 = vld [vmem:[%s641_s5 + $0x20] sm:$0xff]   ;;  %v466_v16 = vld [vmem:[%s641_s5 + $0x28] sm:$0xff]  }
  0x18   :  { %403 = vmatmul.mubr.msk.bf16.vlgmr.msra.gmra.mrb[0].mxu0 %vm63_vm1, %v452_v2  ;;  %v354_v17 = vld [vmem:[%s638_s2] ss:$0 sm:$0xff]  ;;  %v467_v27 = vld [vmem:[%s641_s5 + $0x30] sm:$0xff]   ;;  %v468_v28 = vld [vmem:[%s641_s5 + $0x38] sm:$0xff]  }
  0x19   :  { %442 = vmatprep.mubr.msk.bf16.mxu0 %vm497_vm0, %v496_v0  ;;  %409 = vmatpush3.bf16.msra.mxu1 %v454_v4  ;;  %v358_v29 = vld [vmem:[%s640_s4] ss:$0 sm:$0xff] }
  0x1a   :  { %410 = vmatprep.subr.bf16.mxu1 %v496_v0  ;;  %427 = vmatpush3.bf16.msra.mxu0 %v461_v11  ;;  %v367_v39 = vld [vmem:[%s642_s6] ss:$0 sm:$0xff] }
  0x1b   :  { %428 = vmatprep.subr.bf16.mxu0 %v496_v0 }
  0x1d   :  { %411 = vmatpush3.bf16.msra.mxu1 %v455_v5 }
  0x1e   :  { %412 = vmatprep.subr.bf16.mxu1 %v496_v0  ;;  %429 = vmatpush3.bf16.msra.mxu0 %v462_v12 }
  0x1f   :  { %430 = vmatprep.subr.bf16.mxu0 %v496_v0 }
  0x21   :  { %413 = vmatpush3.bf16.msra.mxu1 %v456_v6 }
  0x22   :  { %414 = vmatprep.subr.bf16.mxu1 %v496_v0  ;;  %431 = vmatpush3.bf16.msra.mxu0 %v463_v13 }
  0x23   :  { %432 = vmatprep.subr.bf16.mxu0 %v496_v0 }
  0x25   :  { %415 = vmatpush3.bf16.msra.mxu1 %v457_v7 }
  0x26   :  { %416 = vmatprep.subr.bf16.mxu1 %v496_v0  ;;  %433 = vmatpush3.bf16.msra.mxu0 %v464_v14 }
  0x27   :  { %434 = vmatprep.subr.bf16.mxu0 %v496_v0 }
  0x29   :  { %417 = vmatpush3.bf16.msra.mxu1 %v458_v8 }
  0x2a   :  { %418 = vmatprep.subr.bf16.mxu1 %v496_v0  ;;  %435 = vmatpush3.bf16.msra.mxu0 %v465_v15 }
  0x2b   :  { %436 = vmatprep.subr.bf16.mxu0 %v496_v0 }
  0x2d   :  { %419 = vmatpush3.bf16.msra.mxu1 %v459_v9 }
  0x2e   :  { %420 = vmatprep.subr.bf16.mxu1 %v496_v0  ;;  %437 = vmatpush3.bf16.msra.mxu0 %v466_v16 }
  0x2f   :  { %438 = vmatprep.subr.bf16.mxu0 %v496_v0 }
  0x31   :  { %421 = vmatpush3.bf16.msra.mxu1 %v460_v10 }
  0x32   :  { %439 = vmatpush3.bf16.msra.mxu0 %v467_v27 }
  0x33   :  { %440 = vmatprep.subr.bf16.mxu0 %v496_v0 }
  0x36   :  { %441 = vmatpush3.bf16.msra.mxu0 %v468_v28 }
  0xeb   :  { %v101_v18 = vpop.f32.mrb[0].mxu0 }
  0xec   :  { %v102_v19 = vadd.f32 %v354_v17, %v101_v18  ;;  %v404_v20 = vpop.f32.mrb[1].mxu0 }
  0xed   :  { %v104_v21 = vpop.f32.mrb[2].mxu0 }
  0xee   :  { %v105_v22 = vadd.f32 %v354_v17, %v104_v21  ;;  %v405_v23 = vpop.f32.mrb[3].mxu0  ;;  %v108_v24 = vmax.f32 %v102_v19, 0.0 }
  0xf0   :  { %v109_v25 = vmax.f32 %v105_v22, 0.0 }
  0xf2   :  { %v110_v26 = vpack.c.bf16 %v109_v25, %v108_v24 }
  0xf4   :  { %423 = vmatmul.mubr.bf16.vlgmr.msra.gmra.mrb[0].mxu1 %v110_v26 }
 0x1c7   :  { %v216_v30 = vpop.f32.mrb[0].mxu1 }
 0x1c8   :  { %v217_v31 = vadd.f32 %v358_v29, %v216_v30  ;;  %v424_v32 = vpop.f32.mrb[1].mxu1 }
 0x1c9   :  { %v219_v33 = vpop.f32.mrb[2].mxu1 }
 0x1ca   :  { %v220_v34 = vadd.f32 %v358_v29, %v219_v33  ;;  %v425_v35 = vpop.f32.mrb[3].mxu1  ;;  %v223_v36 = vmax.f32 %v217_v31, 0.0 }
 0x1cc   :  { %v224_v37 = vmax.f32 %v220_v34, 0.0 }
 0x1ce   :  { %v225_v38 = vpack.c.bf16 %v224_v37, %v223_v36 }
 0x1d0   :  { %443 = vmatmul.mubr.bf16.vlgmr.msra.gmra.mrb[4].mxu0 %v225_v38 }
 0x2a3   :  { %v331_v40 = vpop.f32.mrb[4].mxu0 }
 0x2a4   :  { %v332_v41 = vadd.f32 %v367_v39, %v331_v40  ;;  %v444_v42 = vpop.f32.mrb[5].mxu0 }
 0x2a5   :  { %v334_v43 = vpop.f32.mrb[6].mxu0 }
 0x2a6   :  { %v378_v44 = vpack.c.bf16 %v332_v41, %v332_v41  ;;  %v335_v45 = vadd.f32 %v367_v39, %v334_v43  ;;  %v445_v46 = vpop.f32.mrb[7].mxu0 }
 0x2a8   :  { %347 = vst.msk [vmem:[%s643_s7] sm:$0xf] %vm346_vm2, %v378_v44  ;;  %v379_v47 = vpack.c.bf16 %v335_v45, %v335_v45 }
 0x2aa   :  { %348 = vst.msk [vmem:[%s643_s7 + $0x4] sm:$0xf] %vm346_vm2, %v379_v47 }
 0x2ab   :  { %353 = vsyncpa [#allocation3], 1 }

</bundles_post_ra>
